<compile_context>
chip_gen: v7x
topology: tpu7x:2x2x1
jax: 0.10.0
libtpu: 0.0.40
codegen_flags: <defaults>
</compile_context>

<pallas_src>
import jax
import jax.numpy as jnp
from jax.experimental import pallas as pl
from jax.experimental.pallas import tpu as pltpu


def attention_kernel(x_ref, w1_ref, b1_ref, w2_ref, out_ref):
    # x_ref:  (1, N, D)   w1_ref: (D, H)   b1_ref: (1, H)   w2_ref: (1, H)
    # out_ref: (1, 1, D)
    x = x_ref[0].astype(jnp.float32)  # (N, D)

    # Hidden projection + tanh (MXU matmul + EUP tanh).
    h = jnp.tanh(
        jnp.dot(x, w1_ref[...], preferred_element_type=jnp.float32) + b1_ref[...]
    )  # (N, H)

    # Score per row: VPU multiply + lane reduction instead of a (H,1) MXU matmul.
    # b2 is intentionally omitted — a constant offset cancels in softmax(dim=0).
    e = jnp.sum(h * w2_ref[...], axis=1, keepdims=True)  # (N, 1)

    # Numerically stable softmax over the sequence axis (dim=0).
    e = e - jnp.max(e, axis=0, keepdims=True)
    p = jnp.exp(e)
    attn = p / jnp.sum(p, axis=0, keepdims=True)  # (N, 1)

    # Weighted sum over the sequence axis -> (1, D), written as row 0 of (1,1,D).
    out_ref[0] = jnp.sum(x * attn, axis=0, keepdims=True).astype(out_ref.dtype)


def attention_forward_batched(x, w1, b1, w2_row):
    """x: (B, N, D) float32.  Returns (B, D): one pooled vector per sequence."""
    B, N, D = x.shape
    H = w1.shape[1]

    cost = pl.CostEstimate(
        flops=2 * B * N * D * H + 3 * B * N * H + 2 * B * N * D,
        transcendentals=B * N * (H + 1),               # tanh + exp
        bytes_accessed=4 * (B * N * D + D * H + 2 * H + B * D),
    )

    out = pl.pallas_call(
        attention_kernel,
        out_shape=jax.ShapeDtypeStruct((B, 1, D), x.dtype),
        grid_spec=pltpu.PrefetchScalarGridSpec(
            num_scalar_prefetch=0,
            grid=(B,),
            in_specs=[
                pl.BlockSpec((1, N, D), lambda b: (b, 0, 0)),  # x: one sequence/step
                pl.BlockSpec((D, H), lambda b: (0, 0)),        # w1 (resident)
                pl.BlockSpec((1, H), lambda b: (0, 0)),        # b1 (resident)
                pl.BlockSpec((1, H), lambda b: (0, 0)),        # w2 row (resident)
            ],
            out_specs=pl.BlockSpec((1, 1, D), lambda b: (b, 0, 0)),
        ),
        compiler_params=pltpu.CompilerParams(
            dimension_semantics=("parallel",),  # batch axis splits across cores
        ),
        cost_estimate=cost,
    )(x, w1, b1, w2_row)

    return out[:, 0, :]  # (B, D)

    # TODO(synk): for large N, grid over the sequence axis with a flash-style
    # online softmax (running max / sum + (1, D) accumulator) so x streams
    # through VMEM once instead of requiring the whole sequence resident.


def attention_forward(x, w1, b1, w2, b2=None):
    """Single-sequence API matching the PyTorch module.

    x: (N, D) float32.  Returns (1, D) float32.
    b2 is accepted for interface parity but unused: it cancels in softmax(dim=0).
    """
    del b2
    w2_row = w2.reshape(1, -1)  # (1, H) for the VPU reduction
    return attention_forward_batched(x[None], w1, b1, w2_row)  # (1, D)


def init_params(key, in_dim, hid_dim):
    """Deterministic init matching nn.Linear shapes (stored transposed as (in, out))."""
    k1, k2, k3, k4 = jax.random.split(key, 4)
    bound1 = 1.0 / jnp.sqrt(in_dim)
    bound2 = 1.0 / jnp.sqrt(hid_dim)
    w1 = jax.random.uniform(k1, (in_dim, hid_dim), jnp.float32, -bound1, bound1)
    b1 = jax.random.uniform(k2, (1, hid_dim), jnp.float32, -bound1, bound1)
    w2 = jax.random.uniform(k3, (hid_dim, 1), jnp.float32, -bound2, bound2)
    b2 = jax.random.uniform(k4, (1, 1), jnp.float32, -bound2, bound2)
    return w1, b1, w2, b2


def reference_forward(x, w1, b1, w2, b2):
    """Pure-JAX reference replicating the PyTorch module (includes b2)."""
    e = jnp.tanh(x @ w1 + b1) @ w2 + b2              # (N, 1)
    aw = jax.nn.softmax(e, axis=0)                   # softmax over dim=0
    return jnp.sum(x * aw, axis=0, keepdims=True)    # (1, D)


if __name__ == "__main__":
    key = jax.random.PRNGKey(0)
    kx, kp, kb = jax.random.split(key, 3)

    N, in_dim, hid_dim = 8, 32, 16   # small shapes: seq=8, in_dim=32, hid=16
    B = 4                            # batched demo: 4 independent pools

    x = jax.random.normal(kx, (N, in_dim), jnp.float32)
    w1, b1, w2, b2 = init_params(kp, in_dim, hid_dim)

    # Single-sequence path (matches the PyTorch module interface).
    out = attention_forward(x, w1, b1, w2, b2)
    out = jax.block_until_ready(out)
    ref = reference_forward(x, w1, b1, w2, b2)
    assert out.shape == (1, in_dim)
    assert jnp.allclose(out, ref, atol=1e-5, rtol=1e-5), "single-seq mismatch vs reference"

    # Batched path: B independent sequences in one pallas_call (parallel grid axis).
    xb = jax.random.normal(kb, (B, N, in_dim), jnp.float32)
    out_b = attention_forward_batched(xb, w1, b1, w2.reshape(1, -1))
    out_b = jax.block_until_ready(out_b)
    ref_b = jnp.concatenate(
        [reference_forward(xb[i], w1, b1, w2, b2) for i in range(B)], axis=0
    )
    assert out_b.shape == (B, in_dim)
    assert jnp.allclose(out_b, ref_b, atol=1e-5, rtol=1e-5), "batched mismatch vs reference"

    print("KERNEL_OK")
</pallas_src>

<mosaic_0001>
module attributes {stable_mosaic.version = 11 : i64} {
  func.func @attention_kernel(%arg0: i32, %arg1: memref<1x8x32xf32, #tpu.memory_space<vmem>>, %arg2: memref<32x16xf32, #tpu.memory_space<vmem>>, %arg3: memref<1x16xf32, #tpu.memory_space<vmem>>, %arg4: memref<1x16xf32, #tpu.memory_space<vmem>>, %arg5: memref<1x1x32xf32, #tpu.memory_space<vmem>>) attributes {dimension_semantics = [#tpu.dimension_semantics<parallel>], iteration_bounds = array<i64: 1>, scalar_prefetch = 0 : i64, scratch_operands = 0 : i64, tpu.core_type = #tpu.core_type<tc>, window_params = [{transform_indices = @transform_0, window_bounds = array<i64: 1, 8, 32>}, {pipeline_mode = #tpu.pipeline_mode<synchronous>, transform_indices = @transform_1, window_bounds = array<i64: 32, 16>}, {pipeline_mode = #tpu.pipeline_mode<synchronous>, transform_indices = @transform_2, window_bounds = array<i64: 1, 16>}, {pipeline_mode = #tpu.pipeline_mode<synchronous>, transform_indices = @transform_3, window_bounds = array<i64: 1, 16>}, {transform_indices = @transform_4, window_bounds = array<i64: 1, 1, 32>}]} {
    %c0 = arith.constant 0 : index
    %c0_0 = arith.constant 0 : index
    %c0_1 = arith.constant 0 : index
    %0 = vector.load %arg1[%c0, %c0_0, %c0_1] : memref<1x8x32xf32, #tpu.memory_space<vmem>>, vector<1x8x32xf32>
    %1 = vector.shape_cast %0 : vector<1x8x32xf32> to vector<8x32xf32>
    %c0_2 = arith.constant 0 : index
    %c0_3 = arith.constant 0 : index
    %2 = vector.load %arg2[%c0_2, %c0_3] : memref<32x16xf32, #tpu.memory_space<vmem>>, vector<32x16xf32>
    %cst = arith.constant dense<0.000000e+00> : vector<8x16xf32>
    %3 = tpu.matmul %1, %2, %cst {dimension_numbers = #tpu.dot_dimension_numbers<[1], [0], [0], [1], [0, 0, 1, 1], [], []>} : vector<8x32xf32>, vector<32x16xf32>, vector<8x16xf32> -> vector<8x16xf32>
    %c0_4 = arith.constant 0 : index
    %c0_5 = arith.constant 0 : index
    %4 = vector.load %arg3[%c0_4, %c0_5] : memref<1x16xf32, #tpu.memory_space<vmem>>, vector<1x16xf32>
    %5 = vector.broadcast %4 : vector<1x16xf32> to vector<8x16xf32>
    %6 = arith.addf %3, %5 : vector<8x16xf32>
    %7 = math.tanh %6 : vector<8x16xf32>
    %c0_6 = arith.constant 0 : index
    %c0_7 = arith.constant 0 : index
    %8 = vector.load %arg4[%c0_6, %c0_7] : memref<1x16xf32, #tpu.memory_space<vmem>>, vector<1x16xf32>
    %9 = vector.broadcast %8 : vector<1x16xf32> to vector<8x16xf32>
    %10 = arith.mulf %7, %9 : vector<8x16xf32>
    %cst_8 = arith.constant dense<0.000000e+00> : vector<8xf32>
    %11 = vector.multi_reduction <add>, %10, %cst_8 [1] : vector<8x16xf32> to vector<8xf32>
    %12 = vector.shape_cast %11 : vector<8xf32> to vector<8x1xf32>
    %cst_9 = arith.constant dense<0xFF800000> : vector<1xf32>
    %13 = vector.multi_reduction <maximumf>, %12, %cst_9 [0] : vector<8x1xf32> to vector<1xf32>
    %14 = vector.shape_cast %13 : vector<1xf32> to vector<1x1xf32>
    %15 = vector.broadcast %14 : vector<1x1xf32> to vector<8x1xf32>
    %16 = arith.subf %12, %15 : vector<8x1xf32>
    %17 = math.exp %16 : vector<8x1xf32>
    %cst_10 = arith.constant dense<0.000000e+00> : vector<1xf32>
    %18 = vector.multi_reduction <add>, %17, %cst_10 [0] : vector<8x1xf32> to vector<1xf32>
    %19 = vector.shape_cast %18 : vector<1xf32> to vector<1x1xf32>
    %20 = vector.broadcast %19 : vector<1x1xf32> to vector<8x1xf32>
    %21 = arith.divf %17, %20 : vector<8x1xf32>
    %22 = vector.broadcast %21 : vector<8x1xf32> to vector<8x32xf32>
    %23 = arith.mulf %1, %22 : vector<8x32xf32>
    %cst_11 = arith.constant dense<0.000000e+00> : vector<32xf32>
    %24 = vector.multi_reduction <add>, %23, %cst_11 [0] : vector<8x32xf32> to vector<32xf32>
    %25 = vector.shape_cast %24 : vector<32xf32> to vector<1x32xf32>
    %c0_12 = arith.constant 0 : index
    %c0_13 = arith.constant 0 : index
    %c0_14 = arith.constant 0 : index
    %26 = vector.load %arg5[%c0_12, %c0_13, %c0_14] : memref<1x1x32xf32, #tpu.memory_space<vmem>>, vector<1x1x32xf32>
    %27 = vector.shape_cast %26 : vector<1x1x32xf32> to vector<1x32xf32>
    %28 = vector.shape_cast %25 : vector<1x32xf32> to vector<1x1x32xf32>
    tpu.vector_store %arg5[%c0_12, %c0_13, %c0_14], %28 {strides = array<i32>} : memref<1x1x32xf32, #tpu.memory_space<vmem>>, vector<1x1x32xf32>,
    return
  }
  func.func @transform_0(%arg0: i32) -> (i32, i32, i32) {
    %c0_i32 = arith.constant 0 : i32
    %c0_i32_0 = arith.constant 0 : i32
    %c0_i32_1 = arith.constant 0 : i32
    return %arg0, %c0_i32, %c0_i32_0 : i32, i32, i32
  }
  func.func @transform_1(%arg0: i32) -> (i32, i32) {
    %c0_i32 = arith.constant 0 : i32
    %c0_i32_0 = arith.constant 0 : i32
    %c0_i32_1 = arith.constant 0 : i32
    return %c0_i32, %c0_i32_0 : i32, i32
  }
  func.func @transform_2(%arg0: i32) -> (i32, i32) {
    %c0_i32 = arith.constant 0 : i32
    %c0_i32_0 = arith.constant 0 : i32
    %c0_i32_1 = arith.constant 0 : i32
    return %c0_i32, %c0_i32_0 : i32, i32
  }
  func.func @transform_3(%arg0: i32) -> (i32, i32) {
    %c0_i32 = arith.constant 0 : i32
    %c0_i32_0 = arith.constant 0 : i32
    %c0_i32_1 = arith.constant 0 : i32
    return %c0_i32, %c0_i32_0 : i32, i32
  }
  func.func @transform_4(%arg0: i32) -> (i32, i32, i32) {
    %c0_i32 = arith.constant 0 : i32
    %c0_i32_0 = arith.constant 0 : i32
    %c0_i32_1 = arith.constant 0 : i32
    return %arg0, %c0_i32, %c0_i32_0 : i32, i32, i32
  }
}

</mosaic_0001>

<bundles_post_ra>
// kernel: tpu_custom_call.1
= control target key start
LH: loop header
LB: loop body
LE: loop exit
PB: predicated region body
PF: predicated region fallthrough
CT: control target
= control target key end

     0   :  { %v217_v3 = vmov 0.0|0.0   ;;  %vm218_vm0 = vmmov 0   ;;  %v219_v6 = vmov 0.0   ;;  %s281_s0 = inlined_call_operand.vmem [shape: f32[1,8,32], index: 0, kind: input, shape index: {}]   ;;  %s282_s1 = inlined_call_operand.vmem [shape: f32[32,16], index: 1, kind: input, shape index: {}]   ;;  %s283_s2 = inlined_call_operand.vmem [shape: f32[1,16], index: 2, kind: input, shape index: {}]   ;;  %s284_s3 = inlined_call_operand.vmem [shape: f32[1,16], index: 3, kind: input, shape index: {}]   ;;  %s285_s4 = inlined_call_operand.hbm [shape: f32[1,1,32], index: 4, kind: output, shape index: {}]  }
   0x1   :  { %v19_v0 = vld [vmem:[%s282_s1] sm:$0xff]  ;;  %v20_v1 = vld [vmem:[%s282_s1 + $0x8] sm:$0xff]  ;;  %v21_v2 = vld [vmem:[%s282_s1 + $0x10] sm:$0xff]  ;;  %177 = vmatprep.subr.bf16.mxu0 %v217_v3  ;;  %174 = vmatprep.mubr.msk.f32.mxu0 %vm218_vm0, %v219_v6 }
   0x2   :  { %v178_v4 = vpack.c.bf16 %v20_v1, %v19_v0  ;;  %v22_v5 = vld [vmem:[%s282_s1 + $0x18] sm:$0xff] }
   0x3   :  { %9 = vsyncpa [#allocation3], 0  ;;  %v181_v7 = vpack.c.bf16 %v22_v5, %v21_v2  ;;  %v18_v8 = vld [vmem:[%s281_s0] sm:$0xff]  ;;  %vm30_vm1 = vcmask 261120   ;;  %vm113_vm2 = vcmask 130048   ;;  %s220_s0 = smov [#allocation2]  }
   0x4   :  { %179 = vmatpush3.bf16.msra.mxu0 %v178_v4  ;;  %v158_v9 = vld [vmem:[%s283_s2] ss:$0 sm:$0xff]  ;;  %s150_s2 = sshll.u32 %s220_s0, 4  ;;  %vm142_vm3 = vcmask 253952   ;;  %s151_s2 = int_to_ptr.vmem [resolvable:$true] %s150_s2 }
   0x5   :  { %180 = vmatprep.subr.bf16.mxu0 %v217_v3  ;;  %v160_v13 = vld [vmem:[%s284_s3] ss:$0 sm:$0xff]  ;;  %s193_s3 = scalar_lea.vmem %s151_s2, 16  ;;  %s197_s28 = scalar_lea.vmem %s151_s2, 32 }
   0x6   :  { %p194_p0 = scmp.ne.s32.totalorder %s151_s2, %s193_s3  ;;  %p198_p1 = scmp.lt.s32.totalorder %s151_s2, %s151_s2 }
   0x7   :  { %p199_p2 = scmp.lt.s32.totalorder %s197_s28, %s193_s3 }
   0x8   :  { %182 = vmatpush3.bf16.msra.mxu0 %v181_v7 }
   0x9   :  { %p200_p3 = por %p199_p2, %p198_p1 }
   0xb   :  { %175 = vmatmul.mubr.msk.f32.vlgmr.msra.gmra.mrb[0].mxu0 %vm30_vm1, %v18_v8  ;;  %p201_p4 = pnand %p200_p3, %p194_p0 }
  0xde   :  { %v100_v10 = vpop.f32.mrb[0].mxu0 }
  0xdf   :  { %v101_v11 = vadd.f32 %v158_v9, %v100_v10  ;;  %v176_v12 = vpop.f32.mrb[1].mxu0 }
  0xe1   :  { %187 = vtanh.f32 %v101_v11 }
  0xeb   :  { %v188_v14 = vpop.eup %187 }
  0xec   :  { %v112_v15 = vmul.f32 %v188_v14, %v160_v13 }
  0xee   :  { %v114_v16 = vsel %vm113_vm2, %v112_v15, 0.0 }
  0xef   :  { %115 = vadd.xlane.f32.xlu0 %v114_v16 }
 0x17c   :  { %v116_v17 = vpop.xlane.xlu0 %115 }
 0x17d   :  { %v117_v18 = vrot.slane %v116_v17, 4 }
 0x17f   :  { %v118_v19 = vmax.f32 %v116_v17, %v117_v18 }
 0x181   :  { %v119_v20 = vrot.slane %v118_v19, 2 }
 0x183   :  { %v120_v21 = vmax.f32 %v118_v19, %v119_v20 }
 0x185   :  { %v121_v22 = vrot.slane %v120_v21, 1 }
 0x187   :  { %v122_v23 = vmax.f32 %v120_v21, %v121_v22 }
 0x189   :  { %v123_v24 = vsub.f32 %v116_v17, %v122_v23 }
 0x18b   :  { %v124_v25 = vmul.f32 1.442695, %v123_v24 }
 0x18d   :  { %189 = vpow2.f32 %v124_v25 }
 0x197   :  { %v190_v26 = vpop.eup %189 }
 0x198   :  { %v126_v27 = vrot.slane %v190_v26, 4 }
 0x19a   :  { %v127_v28 = vadd.f32 %v190_v26, %v126_v27 }
 0x19c   :  { %v128_v29 = vrot.slane %v127_v28, 2 }
 0x19e   :  { %v129_v30 = vadd.f32 %v128_v29, %v127_v28 }
 0x1a0   :  { %v130_v31 = vrot.slane %v129_v30, 1 }
 0x1a2   :  { %v131_v32 = vadd.f32 %v130_v31, %v129_v30 }
 0x1a4   :  { %191 = vrcp.f32 %v131_v32 }
 0x1ae   :  { %v192_v33 = vpop.eup %191 }
 0x1af   :  { %v133_v34 = vmul.f32 %v192_v33, %v190_v26 }
 0x1b1   :  { %v134_v35 = vmul.f32 %v133_v34, %v18_v8 }
 0x1b3   :  { %v135_v36 = vsel %vm30_vm1, %v134_v35, 0.0 }
 0x1b4   :  { %v136_v37 = vrot.slane %v135_v36, 4 }
 0x1b6   :  { %v137_v38 = vadd.f32 %v136_v37, %v135_v36 }
 0x1b8   :  { %v138_v39 = vrot.slane %v137_v38, 2 }
 0x1ba   :  { %v139_v40 = vadd.f32 %v138_v39, %v137_v38 }
 0x1bc   :  { %v140_v41 = vrot.slane %v139_v40, 1 }
 0x1be   :  { %v141_v42 = vadd.f32 %v140_v41, %v139_v40 }
 0x1c0   :  { %143 = vst.msk [vmem:[#allocation2] sm:$0x1] %vm142_vm3, %v141_v42 }
 0x1c1   :  { %204 = shalt.err (!%p201_p4)
}
 0x1c2   :  { %s205_s5 = scalar_lea.hbm %s285_s4, 16 }
 0x1c3   :  { %p206_p5 = scmp.ne.s32.totalorder %s285_s4, %s205_s5  ;;  %p209_p6 = scmp.lt.u32.totalorder %s205_s5, %s285_s4 }
 0x1c5   :  { %p211_p7 = pnand %p209_p6, %p206_p5 }
 0x1c7   :  { %214 = shalt.err (!%p211_p7)
}
 0x1c8   :  { %153 = dma.vmem_to_hbm [thread:$0]  %s151_s2, 16, %s285_s4, [#allocation3]  }
 0x1c9   :  { %215 = dma.done.wait [#allocation3], 16  }
 0x1ca   :  { %216 = vsyncadd [#allocation3], 4294967280 }
 0x1cb   :  { %157 = vsyncpa [#allocation3], 1 }

</bundles_post_ra>
